<compile_context>
chip_gen: v7x
topology: tpu7x:2x2x1
jax: 0.10.0
libtpu: 0.0.40
codegen_flags: <defaults>
</compile_context>

<pallas_src>
import itertools
from functools import partial

import numpy as np
import jax
import jax.numpy as jnp
from jax import lax
from jax.experimental import pallas as pl
from jax.experimental.pallas import tpu as pltpu


# ----------------------------- Pallas kernels ------------------------------

def _fused_rep_kernel(x1_ref, x2_ref, we_ref, be_ref, w1_ref, b1_ref,
                      w2_ref, b2_ref, s_ref, zcn_ref, sn_ref, cost_ref):
    """encoder(GAP+linear) -> projector(MLP) -> per-view centering ->
    L2-normalize -> matching cost; both views fused into one M=2N step.

    x1_ref/x2_ref : (N, C, HW)    bf16 views (NCHW flattened over HW)
    we_ref        : (C, R)        bf16 encoder weight (GAP done in-kernel)
    w1/b1, w2/b2  : projector; w2 output zero-padded to Dp=128 lanes
    s_ref         : (2, Ncp, Dp)  bf16 prior (batch padded to Ncp, zeros)
    zcn_ref       : (2, N, Dp)    row-L2-normalized centered projections
    sn_ref        : (2, Ncp, Dp)  row-L2-normalized prior
    cost_ref      : (2, N, Ncp)   -(zc @ s.T); lane-dense store
    """
    n = x1_ref.shape[0]

    # --- encoder: GAP over HW (f32 accumulate on VPU/XLU) + small linear ---
    p1 = jnp.mean(x1_ref[...].astype(jnp.float32), axis=-1)          # (N, C)
    p2 = jnp.mean(x2_ref[...].astype(jnp.float32), axis=-1)
    pooled = jnp.concatenate([p1, p2], axis=0).astype(jnp.bfloat16)  # (2N, C)
    y = jnp.dot(pooled, we_ref[...],
                preferred_element_type=jnp.float32) + be_ref[...]    # (2N, R)

    # --- projector: Linear-ReLU-Linear, bf16 MXU with f32 accumulation -----
    h = jnp.maximum(
        jnp.dot(y.astype(jnp.bfloat16), w1_ref[...],
                preferred_element_type=jnp.float32) + b1_ref[...], 0.0)
    z = jnp.dot(h.astype(jnp.bfloat16), w2_ref[...],
                preferred_element_type=jnp.float32) + b2_ref[...]    # (2N, Dp)

    def l2n(v):                                     # row-wise L2 normalize
        return v * lax.rsqrt(jnp.sum(v * v, axis=-1, keepdims=True) + 1e-12)

    # --- per-view batch centering, matching cost, normalization ------------
    for v, zv in ((0, z[:n]), (1, z[n:])):
        zc = zv - jnp.mean(zv, axis=0, keepdims=True)                # (N, Dp)
        sv = s_ref[v]                                                # (Ncp, Dp)
        # cost_v = -(zc_v @ s_v.T); padded lanes/rows are exact zeros
        cost_ref[v] = -lax.dot_general(zc.astype(jnp.bfloat16), sv,
                                       (((1,), (1,)), ((), ())),
                                       preferred_element_type=jnp.float32)
        zcn_ref[v] = l2n(zc)                         # pre-LAP normalization
        sn_ref[v] = l2n(sv.astype(jnp.float32))


def _loss_kernel(zcn_ref, sn_ref, idx_ref, loss_ref):
    """Post-LAP loss for both views.

    zcn_ref : (2, N, Dp)   normalized centered projections
    sn_ref  : (2, Ncp, Dp) normalized prior samples
    idx_ref : (2, N, 1)    int32 LAP assignment: cids_v from cost_v
    target_v = s_v[cids_v];  loss = 2 - sum(nz1*nt2 + nz2*nt1) / N
    """
    n = zcn_ref.shape[1]
    ncp = sn_ref.shape[1]
    cols = lax.broadcasted_iota(jnp.int32, (n, ncp), 1)
    # gather matched (already normalized) prior rows via on-device one-hot
    oh1 = (cols == idx_ref[0]).astype(jnp.float32)                  # (N, Ncp)
    oh2 = (cols == idx_ref[1]).astype(jnp.float32)
    t1 = jnp.dot(oh1, sn_ref[0], preferred_element_type=jnp.float32)  # (N, Dp)
    t2 = jnp.dot(oh2, sn_ref[1], preferred_element_type=jnp.float32)
    prod = zcn_ref[0] * t2 + zcn_ref[1] * t1       # cross-view pairing (z1,t2)
    total = jnp.sum(jnp.sum(prod, axis=1, keepdims=True), axis=0, keepdims=True)
    loss_ref[...] = 2.0 - total / float(n)


# ----------------------------- pallas_call wrappers -------------------------

def _full_spec(*shape):
    return pl.BlockSpec(shape, lambda i: (0,) * len(shape))


def pallas_fused_rep_cost(x1, x2, w_enc, b_enc, w1, b1, w2p, b2p, s_pad):
    n, c, hw = x1.shape
    r = w_enc.shape[1]
    hd = w1.shape[1]
    _, ncp, dp = s_pad.shape
    # grid=(1,): single fused step (both views, M=2N) -> no per-step overhead,
    # no weight re-fetch / double-buffering concerns.
    return pl.pallas_call(
        _fused_rep_kernel,
        out_shape=(jax.ShapeDtypeStruct((2, n, dp), jnp.float32),
                   jax.ShapeDtypeStruct((2, ncp, dp), jnp.float32),
                   jax.ShapeDtypeStruct((2, n, ncp), jnp.float32)),
        grid=(1,),
        in_specs=[_full_spec(n, c, hw), _full_spec(n, c, hw),
                  _full_spec(c, r), _full_spec(1, r),
                  _full_spec(r, hd), _full_spec(1, hd),
                  _full_spec(hd, dp), _full_spec(1, dp),
                  _full_spec(2, ncp, dp)],
        out_specs=(_full_spec(2, n, dp),
                   _full_spec(2, ncp, dp),
                   _full_spec(2, n, ncp)),
        compiler_params=pltpu.CompilerParams(dimension_semantics=("arbitrary",)),
    )(x1, x2, w_enc, b_enc, w1, b1, w2p, b2p, s_pad)


def pallas_bgm_loss(zcn, sn, idx):
    v, n, dp = zcn.shape
    ncp = sn.shape[1]
    return pl.pallas_call(
        _loss_kernel,
        out_shape=jax.ShapeDtypeStruct((1, 1), jnp.float32),
        grid=(1,),
        in_specs=[_full_spec(v, n, dp), _full_spec(v, ncp, dp),
                  _full_spec(v, n, 1)],
        out_specs=_full_spec(1, 1),
        compiler_params=pltpu.CompilerParams(dimension_semantics=("arbitrary",)),
    )(zcn, sn, idx)


# ----------------------------- jitted device stages --------------------------

@partial(jax.jit, static_argnames=("prior", "d_out"))
def _device_pre(x1, x2, key, w_enc, b_enc, w1, b1, w2p, b2p, *, prior, d_out):
    n, c, h, w = x1.shape
    # NCHW -> (N, C, HW) is a free contiguous reshape; bf16 halves HBM traffic
    x1f = x1.reshape(n, c, h * w).astype(jnp.bfloat16)
    x2f = x2.reshape(n, c, h * w).astype(jnp.bfloat16)
    dp = w2p.shape[1]
    ncp = ((n + 127) // 128) * 128                 # lane-dense cost columns
    if prior == 'gaussian':
        s = jax.random.normal(key, (2, n, d_out), jnp.float32)
    elif prior == 'uniform':
        s = 2.0 * (jax.random.uniform(key, (2, n, d_out), jnp.float32) - 0.5)
    else:
        raise AssertionError(prior)
    # zero-pad prior: batch -> Ncp rows, feature -> Dp lanes (padding is exact 0)
    s_pad = jnp.pad(s, ((0, 0), (0, ncp - n), (0, dp - d_out))).astype(jnp.bfloat16)
    return pallas_fused_rep_cost(x1f, x2f, w_enc, b_enc, w1, b1, w2p, b2p, s_pad)


@jax.jit
def _device_post(zcn, sn, idx):
    return pallas_bgm_loss(zcn, sn, idx)[0, 0]


# ----------------------------- host-side LAP solver -------------------------

def solve_lap_dense(cost):
    """Min-cost linear assignment; cids[i] = column assigned to row i."""
    cost = np.asarray(cost, dtype=np.float64)
    try:
        from scipy.optimize import linear_sum_assignment       # O(n^3)
        _, cids = linear_sum_assignment(cost)
        return cids.astype(np.int32)
    except ImportError:
        # TODO(synk): brute-force fallback, only valid for small batch (n <= 10)
        n = cost.shape[0]
        if n > 10:
            raise RuntimeError("brute-force LAP fallback needs n<=10; install scipy")
        perms = np.array(list(itertools.permutations(range(n))), dtype=np.int64)
        totals = cost[np.arange(n)[None, :], perms].sum(axis=1)
        return perms[int(np.argmin(totals))].astype(np.int32)


# ----------------------------- model ----------------------------------------

class BGMModel:
    """JAX/Pallas re-implementation of the BGM Model forward pass."""

    def __init__(self, key, input_shape=(3, 16, 16), rep_dim=64,
                 proj_shape=(128, 32), prior='gaussian', solver='dense'):
        c, h, w = input_shape
        hid, out = proj_shape
        self.d_out = out
        self.d_pad = ((out + 127) // 128) * 128          # lane-dense projector out
        k = jax.random.split(key, 3)

        # encoder stand-in: GAP (in-kernel) + linear; weight stays (C, R) —
        # no HW-replicated copy (VMEM O(C*R), not O(C*HW*R)).
        self.w_enc = (jax.random.normal(k[0], (c, rep_dim), jnp.float32)
                      / np.sqrt(c)).astype(jnp.bfloat16)
        self.b_enc = jnp.zeros((1, rep_dim), jnp.float32)

        self.w1 = (jax.random.normal(k[1], (rep_dim, hid), jnp.float32)
                   / np.sqrt(rep_dim)).astype(jnp.bfloat16)
        self.b1 = jnp.zeros((1, hid), jnp.float32)
        w2 = jax.random.normal(k[2], (hid, out), jnp.float32) / np.sqrt(hid)
        # pad projector output to 128 lanes; padded columns are exact zeros so
        # centering / cost / normalization / loss are unchanged
        self.w2 = jnp.pad(w2, ((0, 0), (0, self.d_pad - out))).astype(jnp.bfloat16)
        self.b2 = jnp.zeros((1, self.d_pad), jnp.float32)

        self.prior = prior
        self.solver = solver

    def forward(self, x1, x2, key):
        if self.solver != 'dense':
            raise NotImplementedError(f'{self.solver} not implemented.')
        n = x1.shape[0]

        # --- single pre-LAP dispatch: encoder+projector+center+normalize+cost
        zcn, sn, cost = _device_pre(x1, x2, key,
                                    self.w_enc, self.b_enc,
                                    self.w1, self.b1, self.w2, self.b2,
                                    prior=self.prior, d_out=self.d_out)

        # --- single device->host sync; strip lane padding before the LAP
        cost_np = np.asarray(jax.device_get(cost))[:, :, :n]
        cids = np.stack([solve_lap_dense(cost_np[0]),   # target1 = s1[cids1]
                         solve_lap_dense(cost_np[1])])  # target2 = s2[cids2]
        idx = jnp.asarray(cids.reshape(2, n, 1).astype(np.int32))  # O(N) H2D

        # --- single post-LAP dispatch: gather matched priors + loss
        return _device_post(zcn, sn, idx)


# ----------------------------- main ------------------------------------------

if __name__ == "__main__":
    key = jax.random.PRNGKey(0)
    k_param, k_x1, k_x2, k_prior = jax.random.split(key, 4)

    B, C, H, W = 8, 3, 16, 16          # small NCHW views, two augmentations
    x1 = jax.random.normal(k_x1, (B, C, H, W), jnp.float32)
    x2 = jax.random.normal(k_x2, (B, C, H, W), jnp.float32)

    model = BGMModel(k_param, input_shape=(C, H, W), rep_dim=64,
                     proj_shape=(128, 32), prior='gaussian', solver='dense')
    loss = model.forward(x1, x2, k_prior)
    loss = jax.block_until_ready(loss)
    assert np.isfinite(float(loss))
    print("KERNEL_OK")
</pallas_src>

<mosaic_0001>
module attributes {stable_mosaic.version = 11 : i64} {
  func.func @_fused_rep_kernel(%arg0: i32, %arg1: memref<8x3x256xbf16, #tpu.memory_space<vmem>>, %arg2: memref<8x3x256xbf16, #tpu.memory_space<vmem>>, %arg3: memref<3x64xbf16, #tpu.memory_space<vmem>>, %arg4: memref<1x64xf32, #tpu.memory_space<vmem>>, %arg5: memref<64x128xbf16, #tpu.memory_space<vmem>>, %arg6: memref<1x128xf32, #tpu.memory_space<vmem>>, %arg7: memref<128x128xbf16, #tpu.memory_space<vmem>>, %arg8: memref<1x128xf32, #tpu.memory_space<vmem>>, %arg9: memref<2x128x128xbf16, #tpu.memory_space<vmem>>, %arg10: memref<2x8x128xf32, #tpu.memory_space<vmem>>, %arg11: memref<2x128x128xf32, #tpu.memory_space<vmem>>, %arg12: memref<2x8x128xf32, #tpu.memory_space<vmem>>) attributes {dimension_semantics = [#tpu.dimension_semantics<arbitrary>], iteration_bounds = array<i64: 1>, scalar_prefetch = 0 : i64, scratch_operands = 0 : i64, tpu.core_type = #tpu.core_type<tc>, window_params = [{pipeline_mode = #tpu.pipeline_mode<synchronous>, transform_indices = @transform_0, window_bounds = array<i64: 8, 3, 256>}, {pipeline_mode = #tpu.pipeline_mode<synchronous>, transform_indices = @transform_1, window_bounds = array<i64: 8, 3, 256>}, {pipeline_mode = #tpu.pipeline_mode<synchronous>, transform_indices = @transform_2, window_bounds = array<i64: 3, 64>}, {pipeline_mode = #tpu.pipeline_mode<synchronous>, transform_indices = @transform_3, window_bounds = array<i64: 1, 64>}, {pipeline_mode = #tpu.pipeline_mode<synchronous>, transform_indices = @transform_4, window_bounds = array<i64: 64, 128>}, {pipeline_mode = #tpu.pipeline_mode<synchronous>, transform_indices = @transform_5, window_bounds = array<i64: 1, 128>}, {pipeline_mode = #tpu.pipeline_mode<synchronous>, transform_indices = @transform_6, window_bounds = array<i64: 128, 128>}, {pipeline_mode = #tpu.pipeline_mode<synchronous>, transform_indices = @transform_7, window_bounds = array<i64: 1, 128>}, {pipeline_mode = #tpu.pipeline_mode<synchronous>, transform_indices = @transform_8, window_bounds = array<i64: 2, 128, 128>}, {pipeline_mode = #tpu.pipeline_mode<synchronous>, transform_indices = @transform_9, window_bounds = array<i64: 2, 8, 128>}, {pipeline_mode = #tpu.pipeline_mode<synchronous>, transform_indices = @transform_10, window_bounds = array<i64: 2, 128, 128>}, {pipeline_mode = #tpu.pipeline_mode<synchronous>, transform_indices = @transform_11, window_bounds = array<i64: 2, 8, 128>}]} {
    %c0 = arith.constant 0 : index
    %c0_0 = arith.constant 0 : index
    %c0_1 = arith.constant 0 : index
    %0 = vector.load %arg1[%c0, %c0_0, %c0_1] : memref<8x3x256xbf16, #tpu.memory_space<vmem>>, vector<8x3x256xbf16>
    %1 = arith.extf %0 : vector<8x3x256xbf16> to vector<8x3x256xf32>
    %cst = arith.constant dense<0.000000e+00> : vector<8x3xf32>
    %2 = vector.multi_reduction <add>, %1, %cst [2] : vector<8x3x256xf32> to vector<8x3xf32>
    %cst_2 = arith.constant 2.560000e+02 : f32
    %3 = vector.broadcast %cst_2 : f32 to vector<8x3xf32>
    %4 = arith.divf %2, %3 : vector<8x3xf32>
    %c0_3 = arith.constant 0 : index
    %c0_4 = arith.constant 0 : index
    %c0_5 = arith.constant 0 : index
    %5 = vector.load %arg2[%c0_3, %c0_4, %c0_5] : memref<8x3x256xbf16, #tpu.memory_space<vmem>>, vector<8x3x256xbf16>
    %6 = arith.extf %5 : vector<8x3x256xbf16> to vector<8x3x256xf32>
    %cst_6 = arith.constant dense<0.000000e+00> : vector<8x3xf32>
    %7 = vector.multi_reduction <add>, %6, %cst_6 [2] : vector<8x3x256xf32> to vector<8x3xf32>
    %cst_7 = arith.constant 2.560000e+02 : f32
    %8 = vector.broadcast %cst_7 : f32 to vector<8x3xf32>
    %9 = arith.divf %7, %8 : vector<8x3xf32>
    %10 = tpu.concatenate %4, %9 in 0 : vector<8x3xf32>, vector<8x3xf32> -> vector<16x3xf32>
    %11 = arith.truncf %10 : vector<16x3xf32> to vector<16x3xbf16>
    %c0_8 = arith.constant 0 : index
    %c0_9 = arith.constant 0 : index
    %12 = vector.load %arg3[%c0_8, %c0_9] : memref<3x64xbf16, #tpu.memory_space<vmem>>, vector<3x64xbf16>
    %cst_10 = arith.constant dense<0.000000e+00> : vector<16x64xf32>
    %13 = tpu.matmul %11, %12, %cst_10 {dimension_numbers = #tpu.dot_dimension_numbers<[1], [0], [0], [1], [0, 0, 1, 1], [], []>} : vector<16x3xbf16>, vector<3x64xbf16>, vector<16x64xf32> -> vector<16x64xf32>
    %c0_11 = arith.constant 0 : index
    %c0_12 = arith.constant 0 : index
    %14 = vector.load %arg4[%c0_11, %c0_12] : memref<1x64xf32, #tpu.memory_space<vmem>>, vector<1x64xf32>
    %15 = vector.broadcast %14 : vector<1x64xf32> to vector<16x64xf32>
    %16 = arith.addf %13, %15 : vector<16x64xf32>
    %17 = arith.truncf %16 : vector<16x64xf32> to vector<16x64xbf16>
    %c0_13 = arith.constant 0 : index
    %c0_14 = arith.constant 0 : index
    %18 = vector.load %arg5[%c0_13, %c0_14] : memref<64x128xbf16, #tpu.memory_space<vmem>>, vector<64x128xbf16>
    %cst_15 = arith.constant dense<0.000000e+00> : vector<16x128xf32>
    %19 = tpu.matmul %17, %18, %cst_15 {dimension_numbers = #tpu.dot_dimension_numbers<[1], [0], [0], [1], [0, 0, 1, 1], [], []>} : vector<16x64xbf16>, vector<64x128xbf16>, vector<16x128xf32> -> vector<16x128xf32>
    %c0_16 = arith.constant 0 : index
    %c0_17 = arith.constant 0 : index
    %20 = vector.load %arg6[%c0_16, %c0_17] : memref<1x128xf32, #tpu.memory_space<vmem>>, vector<1x128xf32>
    %21 = vector.broadcast %20 : vector<1x128xf32> to vector<16x128xf32>
    %22 = arith.addf %19, %21 : vector<16x128xf32>
    %cst_18 = arith.constant 0.000000e+00 : f32
    %23 = vector.broadcast %cst_18 : f32 to vector<16x128xf32>
    %24 = arith.maximumf %22, %23 : vector<16x128xf32>
    %25 = arith.truncf %24 : vector<16x128xf32> to vector<16x128xbf16>
    %c0_19 = arith.constant 0 : index
    %c0_20 = arith.constant 0 : index
    %26 = vector.load %arg7[%c0_19, %c0_20] : memref<128x128xbf16, #tpu.memory_space<vmem>>, vector<128x128xbf16>
    %cst_21 = arith.constant dense<0.000000e+00> : vector<16x128xf32>
    %27 = tpu.matmul %25, %26, %cst_21 {dimension_numbers = #tpu.dot_dimension_numbers<[1], [0], [0], [1], [0, 0, 1, 1], [], []>} : vector<16x128xbf16>, vector<128x128xbf16>, vector<16x128xf32> -> vector<16x128xf32>
    %c0_22 = arith.constant 0 : index
    %c0_23 = arith.constant 0 : index
    %28 = vector.load %arg8[%c0_22, %c0_23] : memref<1x128xf32, #tpu.memory_space<vmem>>, vector<1x128xf32>
    %29 = vector.broadcast %28 : vector<1x128xf32> to vector<16x128xf32>
    %30 = arith.addf %27, %29 : vector<16x128xf32>
    %31 = vector.extract_strided_slice %30 {offsets = [0, 0], sizes = [8, 128], strides = [1, 1]} : vector<16x128xf32> to vector<8x128xf32>
    %32 = vector.extract_strided_slice %30 {offsets = [8, 0], sizes = [8, 128], strides = [1, 1]} : vector<16x128xf32> to vector<8x128xf32>
    %cst_24 = arith.constant dense<0.000000e+00> : vector<128xf32>
    %33 = vector.multi_reduction <add>, %31, %cst_24 [0] : vector<8x128xf32> to vector<128xf32>
    %34 = vector.shape_cast %33 : vector<128xf32> to vector<1x128xf32>
    %cst_25 = arith.constant 8.000000e+00 : f32
    %35 = vector.broadcast %cst_25 : f32 to vector<1x128xf32>
    %36 = arith.divf %34, %35 : vector<1x128xf32>
    %37 = vector.broadcast %36 : vector<1x128xf32> to vector<8x128xf32>
    %38 = arith.subf %31, %37 : vector<8x128xf32>
    %c0_26 = arith.constant 0 : index
    %c0_27 = arith.constant 0 : index
    %c0_28 = arith.constant 0 : index
    %39 = vector.load %arg9[%c0_26, %c0_27, %c0_28] : memref<2x128x128xbf16, #tpu.memory_space<vmem>>, vector<1x128x128xbf16>
    %40 = vector.shape_cast %39 : vector<1x128x128xbf16> to vector<128x128xbf16>
    %41 = arith.truncf %38 : vector<8x128xf32> to vector<8x128xbf16>
    %cst_29 = arith.constant dense<0.000000e+00> : vector<8x128xf32>
    %42 = tpu.matmul %41, %40, %cst_29 {dimension_numbers = #tpu.dot_dimension_numbers<[1], [1], [0], [0], [0, 0, 1, 0], [], []>} : vector<8x128xbf16>, vector<128x128xbf16>, vector<8x128xf32> -> vector<8x128xf32>
    %cst_30 = arith.constant 0.000000e+00 : f32
    %43 = vector.broadcast %cst_30 : f32 to vector<8x128xf32>
    %44 = arith.subf %43, %42 : vector<8x128xf32>
    %c0_31 = arith.constant 0 : index
    %c0_32 = arith.constant 0 : index
    %c0_33 = arith.constant 0 : index
    %45 = vector.load %arg12[%c0_31, %c0_32, %c0_33] : memref<2x8x128xf32, #tpu.memory_space<vmem>>, vector<1x8x128xf32>
    %46 = vector.shape_cast %45 : vector<1x8x128xf32> to vector<8x128xf32>
    %47 = vector.shape_cast %44 : vector<8x128xf32> to vector<1x8x128xf32>
    tpu.vector_store %arg12[%c0_31, %c0_32, %c0_33], %47 {strides = array<i32>} : memref<2x8x128xf32, #tpu.memory_space<vmem>>, vector<1x8x128xf32>,
    %48 = arith.mulf %38, %38 : vector<8x128xf32>
    %cst_34 = arith.constant dense<0.000000e+00> : vector<8xf32>
    %49 = vector.multi_reduction <add>, %48, %cst_34 [1] : vector<8x128xf32> to vector<8xf32>
    %50 = vector.shape_cast %49 : vector<8xf32> to vector<8x1xf32>
    %cst_35 = arith.constant 9.99999996E-13 : f32
    %51 = vector.broadcast %cst_35 : f32 to vector<8x1xf32>
    %52 = arith.addf %50, %51 : vector<8x1xf32>
    %53 = math.rsqrt %52 : vector<8x1xf32>
    %54 = vector.broadcast %53 : vector<8x1xf32> to vector<8x128xf32>
    %55 = arith.mulf %38, %54 : vector<8x128xf32>
    %c0_36 = arith.constant 0 : index
    %c0_37 = arith.constant 0 : index
    %c0_38 = arith.constant 0 : index
    %56 = vector.load %arg10[%c0_36, %c0_37, %c0_38] : memref<2x8x128xf32, #tpu.memory_space<vmem>>, vector<1x8x128xf32>
    %57 = vector.shape_cast %56 : vector<1x8x128xf32> to vector<8x128xf32>
    %58 = vector.shape_cast %55 : vector<8x128xf32> to vector<1x8x128xf32>
    tpu.vector_store %arg10[%c0_36, %c0_37, %c0_38], %58 {strides = array<i32>} : memref<2x8x128xf32, #tpu.memory_space<vmem>>, vector<1x8x128xf32>,
    %59 = arith.extf %40 : vector<128x128xbf16> to vector<128x128xf32>
    %60 = arith.mulf %59, %59 : vector<128x128xf32>
    %cst_39 = arith.constant dense<0.000000e+00> : vector<128xf32>
    %61 = vector.multi_reduction <add>, %60, %cst_39 [1] : vector<128x128xf32> to vector<128xf32>
    %62 = vector.shape_cast %61 : vector<128xf32> to vector<128x1xf32>
    %cst_40 = arith.constant 9.99999996E-13 : f32
    %63 = vector.broadcast %cst_40 : f32 to vector<128x1xf32>
    %64 = arith.addf %62, %63 : vector<128x1xf32>
    %65 = math.rsqrt %64 : vector<128x1xf32>
    %66 = vector.broadcast %65 : vector<128x1xf32> to vector<128x128xf32>
    %67 = arith.mulf %59, %66 : vector<128x128xf32>
    %c0_41 = arith.constant 0 : index
    %c0_42 = arith.constant 0 : index
    %c0_43 = arith.constant 0 : index
    %68 = vector.load %arg11[%c0_41, %c0_42, %c0_43] : memref<2x128x128xf32, #tpu.memory_space<vmem>>, vector<1x128x128xf32>
    %69 = vector.shape_cast %68 : vector<1x128x128xf32> to vector<128x128xf32>
    %70 = vector.shape_cast %67 : vector<128x128xf32> to vector<1x128x128xf32>
    tpu.vector_store %arg11[%c0_41, %c0_42, %c0_43], %70 {strides = array<i32>} : memref<2x128x128xf32, #tpu.memory_space<vmem>>, vector<1x128x128xf32>,
    %cst_44 = arith.constant dense<0.000000e+00> : vector<128xf32>
    %71 = vector.multi_reduction <add>, %32, %cst_44 [0] : vector<8x128xf32> to vector<128xf32>
    %72 = vector.shape_cast %71 : vector<128xf32> to vector<1x128xf32>
    %cst_45 = arith.constant 8.000000e+00 : f32
    %73 = vector.broadcast %cst_45 : f32 to vector<1x128xf32>
    %74 = arith.divf %72, %73 : vector<1x128xf32>
    %75 = vector.broadcast %74 : vector<1x128xf32> to vector<8x128xf32>
    %76 = arith.subf %32, %75 : vector<8x128xf32>
    %c1 = arith.constant 1 : index
    %c0_46 = arith.constant 0 : index
    %c0_47 = arith.constant 0 : index
    %77 = vector.load %arg9[%c1, %c0_46, %c0_47] : memref<2x128x128xbf16, #tpu.memory_space<vmem>>, vector<1x128x128xbf16>
    %78 = vector.shape_cast %77 : vector<1x128x128xbf16> to vector<128x128xbf16>
    %79 = arith.truncf %76 : vector<8x128xf32> to vector<8x128xbf16>
    %cst_48 = arith.constant dense<0.000000e+00> : vector<8x128xf32>
    %80 = tpu.matmul %79, %78, %cst_48 {dimension_numbers = #tpu.dot_dimension_numbers<[1], [1], [0], [0], [0, 0, 1, 0], [], []>} : vector<8x128xbf16>, vector<128x128xbf16>, vector<8x128xf32> -> vector<8x128xf32>
    %cst_49 = arith.constant 0.000000e+00 : f32
    %81 = vector.broadcast %cst_49 : f32 to vector<8x128xf32>
    %82 = arith.subf %81, %80 : vector<8x128xf32>
    %c1_50 = arith.constant 1 : index
    %c0_51 = arith.constant 0 : index
    %c0_52 = arith.constant 0 : index
    %83 = vector.load %arg12[%c1_50, %c0_51, %c0_52] : memref<2x8x128xf32, #tpu.memory_space<vmem>>, vector<1x8x128xf32>
    %84 = vector.shape_cast %83 : vector<1x8x128xf32> to vector<8x128xf32>
    %85 = vector.shape_cast %82 : vector<8x128xf32> to vector<1x8x128xf32>
    tpu.vector_store %arg12[%c1_50, %c0_51, %c0_52], %85 {strides = array<i32>} : memref<2x8x128xf32, #tpu.memory_space<vmem>>, vector<1x8x128xf32>,
    %86 = arith.mulf %76, %76 : vector<8x128xf32>
    %cst_53 = arith.constant dense<0.000000e+00> : vector<8xf32>
    %87 = vector.multi_reduction <add>, %86, %cst_53 [1] : vector<8x128xf32> to vector<8xf32>
    %88 = vector.shape_cast %87 : vector<8xf32> to vector<8x1xf32>
    %cst_54 = arith.constant 9.99999996E-13 : f32
    %89 = vector.broadcast %cst_54 : f32 to vector<8x1xf32>
    %90 = arith.addf %88, %89 : vector<8x1xf32>
    %91 = math.rsqrt %90 : vector<8x1xf32>
    %92 = vector.broadcast %91 : vector<8x1xf32> to vector<8x128xf32>
    %93 = arith.mulf %76, %92 : vector<8x128xf32>
    %c1_55 = arith.constant 1 : index
    %c0_56 = arith.constant 0 : index
    %c0_57 = arith.constant 0 : index
    %94 = vector.load %arg10[%c1_55, %c0_56, %c0_57] : memref<2x8x128xf32, #tpu.memory_space<vmem>>, vector<1x8x128xf32>
    %95 = vector.shape_cast %94 : vector<1x8x128xf32> to vector<8x128xf32>
    %96 = vector.shape_cast %93 : vector<8x128xf32> to vector<1x8x128xf32>
    tpu.vector_store %arg10[%c1_55, %c0_56, %c0_57], %96 {strides = array<i32>} : memref<2x8x128xf32, #tpu.memory_space<vmem>>, vector<1x8x128xf32>,
    %97 = arith.extf %78 : vector<128x128xbf16> to vector<128x128xf32>
    %98 = arith.mulf %97, %97 : vector<128x128xf32>
    %cst_58 = arith.constant dense<0.000000e+00> : vector<128xf32>
    %99 = vector.multi_reduction <add>, %98, %cst_58 [1] : vector<128x128xf32> to vector<128xf32>
    %100 = vector.shape_cast %99 : vector<128xf32> to vector<128x1xf32>
    %cst_59 = arith.constant 9.99999996E-13 : f32
    %101 = vector.broadcast %cst_59 : f32 to vector<128x1xf32>
    %102 = arith.addf %100, %101 : vector<128x1xf32>
    %103 = math.rsqrt %102 : vector<128x1xf32>
    %104 = vector.broadcast %103 : vector<128x1xf32> to vector<128x128xf32>
    %105 = arith.mulf %97, %104 : vector<128x128xf32>
    %c1_60 = arith.constant 1 : index
    %c0_61 = arith.constant 0 : index
    %c0_62 = arith.constant 0 : index
    %106 = vector.load %arg11[%c1_60, %c0_61, %c0_62] : memref<2x128x128xf32, #tpu.memory_space<vmem>>, vector<1x128x128xf32>
    %107 = vector.shape_cast %106 : vector<1x128x128xf32> to vector<128x128xf32>
    %108 = vector.shape_cast %105 : vector<128x128xf32> to vector<1x128x128xf32>
    tpu.vector_store %arg11[%c1_60, %c0_61, %c0_62], %108 {strides = array<i32>} : memref<2x128x128xf32, #tpu.memory_space<vmem>>, vector<1x128x128xf32>,
    return
  }
  func.func @transform_0(%arg0: i32) -> (i32, i32, i32) {
    %c0_i32 = arith.constant 0 : i32
    %c0_i32_0 = arith.constant 0 : i32
    %c0_i32_1 = arith.constant 0 : i32
    %c0_i32_2 = arith.constant 0 : i32
    return %c0_i32, %c0_i32_0, %c0_i32_1 : i32, i32, i32
  }
  func.func @transform_1(%arg0: i32) -> (i32, i32, i32) {
    %c0_i32 = arith.constant 0 : i32
    %c0_i32_0 = arith.constant 0 : i32
    %c0_i32_1 = arith.constant 0 : i32
    %c0_i32_2 = arith.constant 0 : i32
    return %c0_i32, %c0_i32_0, %c0_i32_1 : i32, i32, i32
  }
  func.func @transform_2(%arg0: i32) -> (i32, i32) {
    %c0_i32 = arith.constant 0 : i32
    %c0_i32_0 = arith.constant 0 : i32
    %c0_i32_1 = arith.constant 0 : i32
    return %c0_i32, %c0_i32_0 : i32, i32
  }
  func.func @transform_3(%arg0: i32) -> (i32, i32) {
    %c0_i32 = arith.constant 0 : i32
    %c0_i32_0 = arith.constant 0 : i32
    %c0_i32_1 = arith.constant 0 : i32
    return %c0_i32, %c0_i32_0 : i32, i32
  }
  func.func @transform_4(%arg0: i32) -> (i32, i32) {
    %c0_i32 = arith.constant 0 : i32
    %c0_i32_0 = arith.constant 0 : i32
    %c0_i32_1 = arith.constant 0 : i32
    return %c0_i32, %c0_i32_0 : i32, i32
  }
  func.func @transform_5(%arg0: i32) -> (i32, i32) {
    %c0_i32 = arith.constant 0 : i32
    %c0_i32_0 = arith.constant 0 : i32
    %c0_i32_1 = arith.constant 0 : i32
    return %c0_i32, %c0_i32_0 : i32, i32
  }
  func.func @transform_6(%arg0: i32) -> (i32, i32) {
    %c0_i32 = arith.constant 0 : i32
    %c0_i32_0 = arith.constant 0 : i32
    %c0_i32_1 = arith.constant 0 : i32
    return %c0_i32, %c0_i32_0 : i32, i32
  }
  func.func @transform_7(%arg0: i32) -> (i32, i32) {
    %c0_i32 = arith.constant 0 : i32
    %c0_i32_0 = arith.constant 0 : i32
    %c0_i32_1 = arith.constant 0 : i32
    return %c0_i32, %c0_i32_0 : i32, i32
  }
  func.func @transform_8(%arg0: i32) -> (i32, i32, i32) {
    %c0_i32 = arith.constant 0 : i32
    %c0_i32_0 = arith.constant 0 : i32
    %c0_i32_1 = arith.constant 0 : i32
    %c0_i32_2 = arith.constant 0 : i32
    return %c0_i32, %c0_i32_0, %c0_i32_1 : i32, i32, i32
  }
  func.func @transform_9(%arg0: i32) -> (i32, i32, i32) {
    %c0_i32 = arith.constant 0 : i32
    %c0_i32_0 = arith.constant 0 : i32
    %c0_i32_1 = arith.constant 0 : i32
    %c0_i32_2 = arith.constant 0 : i32
    return %c0_i32, %c0_i32_0, %c0_i32_1 : i32, i32, i32
  }
  func.func @transform_10(%arg0: i32) -> (i32, i32, i32) {
    %c0_i32 = arith.constant 0 : i32
    %c0_i32_0 = arith.constant 0 : i32
    %c0_i32_1 = arith.constant 0 : i32
    %c0_i32_2 = arith.constant 0 : i32
    return %c0_i32, %c0_i32_0, %c0_i32_1 : i32, i32, i32
  }
  func.func @transform_11(%arg0: i32) -> (i32, i32, i32) {
    %c0_i32 = arith.constant 0 : i32
    %c0_i32_0 = arith.constant 0 : i32
    %c0_i32_1 = arith.constant 0 : i32
    %c0_i32_2 = arith.constant 0 : i32
    return %c0_i32, %c0_i32_0, %c0_i32_1 : i32, i32, i32
  }
}

</mosaic_0001>

<bundles_post_ra>
// kernel: _device_pre.1
= control target key start
LH: loop header
LB: loop body
LE: loop exit
PB: predicated region body
PF: predicated region fallthrough
CT: control target
= control target key end

     0   :  { %17 = vsyncpa [#allocation3], 0  ;;  %vm78_vm0 = vcmask 1042432   ;;  %s2013_s0 = inlined_call_operand.vmem [shape: bf16[8,3,256], index: 0, kind: input, shape index: {}]   ;;  %s2014_s1 = inlined_call_operand.vmem [shape: bf16[8,3,256], index: 1, kind: input, shape index: {}]   ;;  %s2015_s2 = inlined_call_operand.vmem [shape: bf16[3,64], index: 2, kind: input, shape index: {}]   ;;  %s2016_s3 = inlined_call_operand.vmem [shape: f32[1,64], index: 3, kind: input, shape index: {}]   ;;  %s2017_s4 = inlined_call_operand.vmem [shape: bf16[64,128], index: 4, kind: input, shape index: {}]   ;;  %s2018_s5 = inlined_call_operand.vmem [shape: f32[1,128], index: 5, kind: input, shape index: {}]   ;;  %s2019_s6 = inlined_call_operand.vmem [shape: bf16[128,128], index: 6, kind: input, shape index: {}]   ;;  %s2020_s7 = inlined_call_operand.vmem [shape: f32[1,128], index: 7, kind: input, shape index: {}]   ;;  %s2021_s8 = inlined_call_operand.vmem [shape: bf16[2,128,128], index: 8, kind: input, shape index: {}]   ;;  %s2022_s9 = inlined_call_operand.hbm [shape: f32[2,8,128], index: 9, kind: output, shape index: {0}]   ;;  %s2023_s10 = inlined_call_operand.hbm [shape: f32[2,128,128], index: 10, kind: output, shape index: {1}]   ;;  %s2024_s11 = inlined_call_operand.hbm [shape: f32[2,8,128], index: 11, kind: output, shape index: {2}]  }
   0x1   :  { %v1200_v0 = vld [vmem:[%s2014_s1] sm:$0xff]   ;;  %v1218_v2 = vld [vmem:[%s2014_s1 + $0x8] sm:$0xff]   ;;  %v1219_v23 = vld [vmem:[%s2014_s1 + $0x10] sm:$0xff]  }
   0x2   :  { %v1184_v1 = vld [vmem:[%s2013_s0] sm:$0xff]   ;;  %v1201_v3 = vunpack.c.l.bf16 %v1200_v0  ;;  %v1202_v5 = vunpack.c.h.bf16 %v1200_v0  ;;  %v1215_v7 = vld [vmem:[%s2013_s0 + $0x8] sm:$0xff]   ;;  %v1205_v8 = vunpack.c.l.bf16 %v1218_v2  ;;  %v1206_v10 = vunpack.c.h.bf16 %v1218_v2  ;;  %v1216_v30 = vld [vmem:[%s2013_s0 + $0x10] sm:$0xff]  }
   0x3   :  { %v1185_v4 = vunpack.c.l.bf16 %v1184_v1  ;;  %v1186_v6 = vunpack.c.h.bf16 %v1184_v1  ;;  %v1189_v9 = vunpack.c.l.bf16 %v1215_v7  ;;  %v1190_v18 = vunpack.c.h.bf16 %v1215_v7  ;;  %v1220_v46 = vld [vmem:[%s2014_s1 + $0x18] sm:$0xff]  }
   0x4   :  { %v152_v11 = vcombine.high %v1201_v3, %v1201_v3  ;;  %v168_v12 = vsel %vm78_vm0, %v1201_v3, 0.0  ;;  %v153_v15 = vcombine.high %v1202_v5, %v1202_v5  ;;  %v173_v16 = vsel %vm78_vm0, %v1202_v5, 0.0  ;;  %v1217_v51 = vld [vmem:[%s2013_s0 + $0x18] sm:$0xff]  }
   0x5   :  { %v62_v13 = vcombine.high %v1185_v4, %v1185_v4  ;;  %v79_v14 = vsel %vm78_vm0, %v1185_v4, 0.0  ;;  %v63_v17 = vcombine.high %v1186_v6, %v1186_v6  ;;  %v84_v21 = vsel %vm78_vm0, %v1186_v6, 0.0 }
   0x6   :  { %v169_v19 = vsel %vm78_vm0, %v152_v11, 0.0  ;;  %v154_v22 = vcombine.high %v1205_v8, %v1205_v8  ;;  %v174_v26 = vsel %vm78_vm0, %v153_v15, 0.0  ;;  %v178_v28 = vsel %vm78_vm0, %v1205_v8, 0.0 }
   0x7   :  { %v80_v20 = vsel %vm78_vm0, %v62_v13, 0.0  ;;  %v170_v24 = vadd.f32 %v169_v19, %v168_v12  ;;  %v85_v27 = vsel %vm78_vm0, %v63_v17, 0.0  ;;  %v64_v29 = vcombine.high %v1189_v9, %v1189_v9 }
   0x8   :  { %v81_v25 = vadd.f32 %v80_v20, %v79_v14  ;;  %v175_v31 = vadd.f32 %v174_v26, %v173_v16  ;;  %v86_v32 = vadd.f32 %v85_v27, %v84_v21  ;;  %v179_v33 = vsel %vm78_vm0, %v154_v22, 0.0 }
   0x9   :  { %171 = vadd.xlane.f32.xlu1 %v170_v24  ;;  %v155_v34 = vcombine.high %v1206_v10, %v1206_v10  ;;  %v89_v35 = vsel %vm78_vm0, %v1189_v9, 0.0  ;;  %v90_v36 = vsel %vm78_vm0, %v64_v29, 0.0  ;;  %v65_v37 = vcombine.high %v1190_v18, %v1190_v18 }
   0xa   :  { %82 = vadd.xlane.f32.xlu0 %v81_v25  ;;  %v1209_v38 = vunpack.c.l.bf16 %v1219_v23  ;;  %v1193_v39 = vunpack.c.l.bf16 %v1216_v30  ;;  %v180_v40 = vadd.f32 %v179_v33, %v178_v28  ;;  %v183_v41 = vsel %vm78_vm0, %v1206_v10, 0.0 }
   0xb   :  { %v91_v42 = vadd.f32 %v90_v36, %v89_v35  ;;  %v184_v43 = vsel %vm78_vm0, %v155_v34, 0.0  ;;  %v1210_v45 = vunpack.c.h.bf16 %v1219_v23  ;;  %v94_v47 = vsel %vm78_vm0, %v1190_v18, 0.0 }
   0xc   :  { %v156_v44 = vcombine.high %v1209_v38, %v1209_v38  ;;  %v95_v48 = vsel %vm78_vm0, %v65_v37, 0.0  ;;  %v66_v49 = vcombine.high %v1193_v39, %v1193_v39  ;;  %v1194_v50 = vunpack.c.h.bf16 %v1216_v30 }
   0xd   :  { %176 = vadd.xlane.f32.xlu1 %v175_v31  ;;  %v185_v52 = vadd.f32 %v184_v43, %v183_v41  ;;  %v188_v53 = vsel %vm78_vm0, %v1209_v38, 0.0 }
   0xe   :  { %87 = vadd.xlane.f32.xlu0 %v86_v32 }
   0xf   :  { %18 = vsyncpa [#allocation5], 0  ;;  %v96_v54 = vadd.f32 %v95_v48, %v94_v47  ;;  %v189_v55 = vsel %vm78_vm0, %v156_v44, 0.0  ;;  %v157_v56 = vcombine.high %v1210_v45, %v1210_v45  ;;  %v1213_v57 = vunpack.c.l.bf16 %v1220_v46  ;;  %v322_v26 = vld [vmem:[%s2015_s2] sm:$0x3] }
  0x10   :  { %v99_v58 = vsel %vm78_vm0, %v1193_v39, 0.0  ;;  %v100_v59 = vsel %vm78_vm0, %v66_v49, 0.0  ;;  %v67_v60 = vcombine.high %v1194_v50, %v1194_v50  ;;  %v1197_v61 = vunpack.c.l.bf16 %v1217_v51 }
  0x11   :  { %181 = vadd.xlane.f32.xlu1 %v180_v40  ;;  %v190_v62 = vadd.f32 %v189_v55, %v188_v53  ;;  %v193_v63 = vsel %vm78_vm0, %v1210_v45, 0.0  ;;  %v101_v0 = vadd.f32 %v100_v59, %v99_v58  ;;  %v194_v1 = vsel %vm78_vm0, %v157_v56, 0.0 }
  0x12   :  { %92 = vadd.xlane.f32.xlu0 %v91_v42  ;;  %v104_v2 = vsel %vm78_vm0, %v1194_v50, 0.0  ;;  %v158_v3 = vcombine.high %v1213_v57, %v1213_v57  ;;  %v105_v4 = vsel %vm78_vm0, %v67_v60, 0.0  ;;  %v68_v5 = vcombine.high %v1197_v61, %v1197_v61 }
  0x13   :  { %v1214_v6 = vunpack.c.h.bf16 %v1220_v46  ;;  %v1198_v7 = vunpack.c.h.bf16 %v1217_v51  ;;  %v195_v8 = vadd.f32 %v194_v1, %v193_v63  ;;  %v106_v9 = vadd.f32 %v105_v4, %v104_v2 }
  0x14   :  { %v198_v10 = vsel %vm78_vm0, %v1213_v57, 0.0  ;;  %v109_v11 = vsel %vm78_vm0, %v1197_v61, 0.0  ;;  %v199_v12 = vsel %vm78_vm0, %v158_v3, 0.0  ;;  %v110_v13 = vsel %vm78_vm0, %v68_v5, 0.0 }
  0x15   :  { %186 = vadd.xlane.f32.xlu1 %v185_v52  ;;  %v159_v14 = vcombine.high %v1214_v6, %v1214_v6  ;;  %v69_v15 = vcombine.high %v1198_v7, %v1198_v7  ;;  %v200_v16 = vadd.f32 %v199_v12, %v198_v10  ;;  %v111_v17 = vadd.f32 %v110_v13, %v109_v11 }
  0x16   :  { %97 = vadd.xlane.f32.xlu0 %v96_v54  ;;  %v203_v18 = vsel %vm78_vm0, %v1214_v6, 0.0  ;;  %v114_v20 = vsel %vm78_vm0, %v1198_v7, 0.0  ;;  %vm334_vm1 = vcmask 1040384   ;;  %vm335_vm2 = vcmask 1041408  }
  0x17   :  { %v204_v19 = vsel %vm78_vm0, %v159_v14, 0.0  ;;  %v115_v21 = vsel %vm78_vm0, %v69_v15, 0.0  ;;  %v1523_v24 = vmov 65535   ;;  %v1524_v29 = vmov 0.0  }
  0x18   :  { %v205_v22 = vadd.f32 %v204_v19, %v203_v18  ;;  %v116_v23 = vadd.f32 %v115_v21, %v114_v20  ;;  %v336_v25 = vsel %vm334_vm1, 4294967295, %v1523_v24  ;;  %1255 = vmatprep.subr.bf16.mxu1 %v1524_v29  ;;  %1273 = vmatprep.subr.bf16.mxu0 %v1524_v29  ;;  %vm1525_vm3 = vmmov 0  }
  0x19   :  { %191 = vadd.xlane.f32.xlu1 %v190_v62  ;;  %v337_v27 = vsel %vm335_vm2, %v336_v25, 0  ;;  %1257 = vmatprep.mubr.msk.bf16.mxu1 %vm1525_vm3, %v1524_v29  ;;  %v224_v36 = vlaneseq  ;;  %vm258_vm4 = vcmask 1041409   ;;  %vm260_vm5 = vcmask 1042434  }
  0x1a   :  { %102 = vadd.xlane.f32.xlu0 %v101_v0  ;;  %v339_v28 = vand.u32 %v337_v27, %v322_v26  ;;  %1289 = vmatprep.mubr.msk.bf16.mxu0 %vm1525_vm3, %v1524_v29  ;;  %vm262_vm6 = vcmask 1043459   ;;  %vm264_vm7 = vcmask 1044484   ;;  %vm266_vm8 = vcmask 1045509  }
  0x1b   :  { %v225_v39 = vand.u32 127, %v224_v36  ;;  %v227_v40 = vshrl.u32 %v224_v36, 7  ;;  %vm268_vm9 = vcmask 1046534   ;;  %vm270_vm10 = vcmask 1047559   ;;  %v1343_v36 = vld [vmem:[%s2017_s4 + $0x10] sm:$0xff]  }
  0x1c   :  { %1256 = vmatpush3.bf16.msra.mxu1 %v339_v28  ;;  %vm330_vm11 = vcmask 23552   ;;  %vm422_vm12 = vcmask 523264  }
  0x1d   :  { %196 = vadd.xlane.f32.xlu1 %v195_v8  ;;  %1261 = vmatprep.subr.bf16.mxu1 %v1524_v29  ;;  %v228_v43 = vsub.s32 %v225_v39, %v227_v40  ;;  %v1346_v39 = vld [vmem:[%s2019_s6 + $0x8] sm:$0xff]   ;;  %v1347_v40 = vld [vmem:[%s2019_s6 + $0x10] sm:$0xff]  }
  0x1e   :  { %107 = vadd.xlane.f32.xlu0 %v106_v9 }
  0x21   :  { %201 = vadd.xlane.f32.xlu1 %v200_v16 }
  0x22   :  { %112 = vadd.xlane.f32.xlu0 %v111_v17 }
  0x25   :  { %206 = vadd.xlane.f32.xlu1 %v205_v22 }
  0x26   :  { %117 = vadd.xlane.f32.xlu0 %v116_v23 }
  0x96   :  { %v172_v30 = vpop.xlane.xlu1 %171 }
  0x97   :  { %v83_v31 = vpop.xlane.xlu0 %82  ;;  %v208_v46 = vmul.f32 0.00390625, %v172_v30 }
  0x98   :  { %v120_v47 = vmul.f32 0.00390625, %v83_v31 }
  0x99   :  { %v284_v60 = vrot.slane %v208_v46, %v228_v43 }
  0x9a   :  { %v177_v32 = vpop.xlane.xlu1 %176  ;;  %v229_v61 = vrot.slane %v120_v47, %v228_v43 }
  0x9b   :  { %v88_v33 = vpop.xlane.xlu0 %87  ;;  %v209_v44 = vmul.f32 0.00390625, %v177_v32 }
  0x9c   :  { %v121_v45 = vmul.f32 0.00390625, %v88_v33  ;;  %v1341_v33 = vld [vmem:[%s2017_s4] sm:$0xff]  }
  0x9d   :  { %v288_v56 = vrot.slane %v209_v44, %v228_v43  ;;  %v1134_v44 = vld [vmem:[%s2016_s3] ss:$0 sm:$0xff] }
  0x9e   :  { %v182_v34 = vpop.xlane.xlu1 %181  ;;  %v233_v57 = vrot.slane %v121_v45, %v228_v43 }
  0x9f   :  { %v93_v35 = vpop.xlane.xlu0 %92  ;;  %v210_v48 = vmul.f32 0.00390625, %v182_v34  ;;  %v313_v8 = vsel %vm258_vm4, %v288_v56, %v284_v60  ;;  %v595_v60 = vld [vmem:[%s2021_s8 + $0x10] sm:$0xff]  }
  0xa0   :  { %v122_v49 = vmul.f32 0.00390625, %v93_v35  ;;  %v259_v9 = vsel %vm258_vm4, %v233_v57, %v229_v61  ;;  %v1342_v35 = vld [vmem:[%s2017_s4 + $0x8] sm:$0xff]  }
  0xa1   :  { %v292_v62 = vrot.slane %v210_v48, %v228_v43  ;;  %v593_v57 = vld [vmem:[%s2021_s8 + $0x8] sm:$0xff]  }
  0xa2   :  { %v187_v37 = vpop.xlane.xlu1 %186  ;;  %v237_v63 = vrot.slane %v122_v49, %v228_v43 }
  0xa3   :  { %v98_v38 = vpop.xlane.xlu0 %97  ;;  %v211_v52 = vmul.f32 0.00390625, %v187_v37  ;;  %v314_v12 = vsel %vm260_vm5, %v292_v62, %v313_v8  ;;  %v1344_v37 = vld [vmem:[%s2017_s4 + $0x18] sm:$0xff]   ;;  %v599_v8 = vld [vmem:[%s2021_s8 + $0x20] sm:$0xff]  }
  0xa4   :  { %v123_v53 = vmul.f32 0.00390625, %v98_v38  ;;  %v261_v13 = vsel %vm260_vm5, %v237_v63, %v259_v9  ;;  %v1345_v38 = vld [vmem:[%s2019_s6] sm:$0xff]  }
  0xa5   :  { %v296_v2 = vrot.slane %v211_v52, %v228_v43  ;;  %1274 = vmatpush3.bf16.msra.mxu0 %v1345_v38  ;;  %v1351_v52 = vld [vmem:[%s2019_s6 + $0x30] sm:$0xff]  }
  0xa6   :  { %v192_v41 = vpop.xlane.xlu1 %191  ;;  %v241_v3 = vrot.slane %v123_v53, %v228_v43  ;;  %1275 = vmatprep.subr.bf16.mxu0 %v1524_v29  ;;  %v1352_v53 = vld [vmem:[%s2019_s6 + $0x38] sm:$0xff]  }
  0xa7   :  { %v103_v42 = vpop.xlane.xlu0 %102  ;;  %v212_v54 = vmul.f32 0.00390625, %v192_v41  ;;  %v315_v18 = vsel %vm262_vm6, %v296_v2, %v314_v12  ;;  %v1348_v41 = vld [vmem:[%s2019_s6 + $0x18] sm:$0xff]   ;;  %v1752_v2 = vunpack.c.h.bf16 %v595_v60  ;;  %v1775_v12 = vunpack.c.h.bf16 %v599_v8 }
  0xa8   :  { %v124_v55 = vmul.f32 0.00390625, %v103_v42  ;;  %v263_v19 = vsel %vm262_vm6, %v241_v3, %v261_v13  ;;  %v1349_v42 = vld [vmem:[%s2019_s6 + $0x20] sm:$0xff]  }
  0xa9   :  { %v300_v6 = vrot.slane %v212_v54, %v228_v43  ;;  %1276 = vmatpush3.bf16.msra.mxu0 %v1346_v39  ;;  %v591_v54 = vld [vmem:[%s2021_s8] sm:$0xff]   ;;  %v1163_v39 = vld [vmem:[%s2021_s8 + $0x50] sm:$0xff]  }
  0xaa   :  { %v197_v50 = vpop.xlane.xlu1 %196  ;;  %v245_v7 = vrot.slane %v124_v55, %v228_v43  ;;  %1277 = vmatprep.subr.bf16.mxu0 %v1524_v29  ;;  %v1727_v55 = vunpack.c.l.bf16 %v591_v54  ;;  %v1729_v56 = vunpack.c.h.bf16 %v591_v54 }
  0xab   :  { %v108_v51 = vpop.xlane.xlu0 %107  ;;  %v213_v58 = vmul.f32 0.00390625, %v197_v50  ;;  %v316_v22 = vsel %vm264_vm7, %v300_v6, %v315_v18  ;;  %v603_v18 = vld [vmem:[%s2021_s8 + $0x30] sm:$0xff]  }
  0xac   :  { %v125_v59 = vmul.f32 0.00390625, %v108_v51  ;;  %v265_v23 = vsel %vm264_vm7, %v245_v7, %v263_v19  ;;  %v721_v61 = vmul.f32 %v1727_v55, %v1727_v55  ;;  %v722_v62 = vmul.f32 %v1729_v56, %v1729_v56 }
  0xad   :  { %v304_v10 = vrot.slane %v213_v58, %v228_v43  ;;  %1278 = vmatpush3.bf16.msra.mxu0 %v1347_v40  ;;  %v1734_v58 = vunpack.c.l.bf16 %v593_v57 }
  0xae   :  { %v202_v0 = vpop.xlane.xlu1 %201  ;;  %v249_v11 = vrot.slane %v125_v59, %v228_v43  ;;  %1279 = vmatprep.subr.bf16.mxu0 %v1524_v29  ;;  %v1736_v59 = vunpack.c.h.bf16 %v593_v57  ;;  %737 = vadd.xlane.f32.xlu0 %v721_v61  ;;  %v1167_v61 = vld [vmem:[%s2021_s8 + $0x60] sm:$0xff]  }
  0xaf   :  { %v113_v1 = vpop.xlane.xlu0 %112  ;;  %v214_v4 = vmul.f32 0.00390625, %v202_v0  ;;  %v317_v24 = vsel %vm266_vm8, %v304_v10, %v316_v22  ;;  %739 = vadd.xlane.f32.xlu1 %v722_v62  ;;  %v723_v63 = vmul.f32 %v1734_v58, %v1734_v58  ;;  %v1798_v22 = vunpack.c.h.bf16 %v603_v18  ;;  %v1169_v62 = vld [vmem:[%s2021_s8 + $0x68] sm:$0xff]  }
  0xb0   :  { %v126_v5 = vmul.f32 0.00390625, %v113_v1  ;;  %v267_v25 = vsel %vm266_vm8, %v249_v11, %v265_v23  ;;  %v724_v0 = vmul.f32 %v1736_v59, %v1736_v59  ;;  %v1750_v1 = vunpack.c.l.bf16 %v595_v60 }
  0xb1   :  { %v308_v14 = vrot.slane %v214_v4, %v228_v43  ;;  %1280 = vmatpush3.bf16.msra.mxu0 %v1348_v41  ;;  %v726_v4 = vmul.f32 %v1752_v2, %v1752_v2  ;;  %v1773_v11 = vunpack.c.l.bf16 %v599_v8 }
  0xb2   :  { %v253_v15 = vrot.slane %v126_v5, %v228_v43  ;;  %v207_v16 = vpop.xlane.xlu1 %206  ;;  %1281 = vmatprep.subr.bf16.mxu0 %v1524_v29  ;;  %741 = vadd.xlane.f32.xlu0 %v723_v63  ;;  %v725_v3 = vmul.f32 %v1750_v1, %v1750_v1  ;;  %v597_v5 = vld [vmem:[%s2021_s8 + $0x18] sm:$0xff]  }
  0xb3   :  { %v118_v17 = vpop.xlane.xlu0 %117  ;;  %v215_v20 = vmul.f32 0.00390625, %v207_v16  ;;  %v318_v28 = vsel %vm268_vm9, %v308_v14, %v317_v24  ;;  %743 = vadd.xlane.f32.xlu1 %v724_v0  ;;  %v1761_v6 = vunpack.c.l.bf16 %v597_v5  ;;  %v1763_v7 = vunpack.c.h.bf16 %v597_v5 }
  0xb4   :  { %v127_v21 = vmul.f32 0.00390625, %v118_v17  ;;  %v269_v30 = vsel %vm268_vm9, %v253_v15, %v267_v25  ;;  %v729_v13 = vmul.f32 %v1773_v11, %v1773_v11  ;;  %v730_v14 = vmul.f32 %v1775_v12, %v1775_v12  ;;  %v601_v15 = vld [vmem:[%s2021_s8 + $0x28] sm:$0xff]   ;;  %v605_v25 = vld [vmem:[%s2021_s8 + $0x38] sm:$0xff]  }
  0xb5   :  { %v312_v26 = vrot.slane %v215_v20, %v228_v43  ;;  %1282 = vmatpush3.bf16.msra.mxu0 %v1349_v42  ;;  %v727_v9 = vmul.f32 %v1761_v6, %v1761_v6  ;;  %v728_v10 = vmul.f32 %v1763_v7, %v1763_v7  ;;  %v1784_v16 = vunpack.c.l.bf16 %v601_v15 }
  0xb6   :  { %v257_v27 = vrot.slane %v127_v21, %v228_v43  ;;  %v1350_v43 = vld [vmem:[%s2019_s6 + $0x28] sm:$0xff]   ;;  %1283 = vmatprep.subr.bf16.mxu0 %v1524_v29  ;;  %745 = vadd.xlane.f32.xlu0 %v725_v3  ;;  %v1786_v17 = vunpack.c.h.bf16 %v601_v15  ;;  %v1796_v21 = vunpack.c.l.bf16 %v603_v18  ;;  %v734_v24 = vmul.f32 %v1798_v22, %v1798_v22 }
  0xb7   :  { %v319_v31 = vsel %vm270_vm10, %v312_v26, %v318_v28  ;;  %747 = vadd.xlane.f32.xlu1 %v726_v4  ;;  %v731_v19 = vmul.f32 %v1784_v16, %v1784_v16  ;;  %v1807_v26 = vunpack.c.l.bf16 %v605_v25  ;;  %v1159_v28 = vld [vmem:[%s2021_s8 + $0x40] sm:$0xff]   ;;  %v1842_v42 = vunpack.c.l.bf16 %v1163_v39 }
  0xb8   :  { %v271_v32 = vsel %vm270_vm10, %v257_v27, %v269_v30  ;;  %v732_v20 = vmul.f32 %v1786_v17, %v1786_v17  ;;  %v733_v23 = vmul.f32 %v1796_v21, %v1796_v21  ;;  %v1809_v27 = vunpack.c.h.bf16 %v605_v25 }
  0xb9   :  { %v321_v34 = vpack.c.bf16 %v319_v31, %v271_v32  ;;  %1284 = vmatpush3.bf16.msra.mxu0 %v1350_v43  ;;  %v735_v30 = vmul.f32 %v1807_v26, %v1807_v26  ;;  %v1819_v32 = vunpack.c.l.bf16 %v1159_v28  ;;  %v1844_v43 = vunpack.c.h.bf16 %v1163_v39 }
  0xba   :  { %1285 = vmatprep.subr.bf16.mxu0 %v1524_v29  ;;  %749 = vadd.xlane.f32.xlu0 %v727_v9  ;;  %v736_v31 = vmul.f32 %v1809_v27, %v1809_v27  ;;  %v1884_v9 = vunpack.c.h.bf16 %v1167_v61 }
  0xbb   :  { %1258 = vmatmul.mubr.msk.bf16.vlgmr.msra.gmra.mrb[0].mxu1 %vm330_vm11, %v321_v34  ;;  %751 = vadd.xlane.f32.xlu1 %v728_v10  ;;  %v1161_v34 = vld [vmem:[%s2021_s8 + $0x48] sm:$0xff]  }
  0xbc   :  { %1262 = vmatpush3.bf16.msra.mxu1 %v1341_v33  ;;  %1269 = vmatprep.mubr.msk.bf16.mxu1 %vm1525_vm3, %v1524_v29  ;;  %v1821_v33 = vunpack.c.h.bf16 %v1159_v28  ;;  %v1832_v38 = vunpack.c.h.bf16 %v1161_v34  ;;  %v983_v10 = vmul.f32 %v1884_v9, %v1884_v9 }
  0xbd   :  { %1263 = vmatprep.subr.bf16.mxu1 %v1524_v29  ;;  %1286 = vmatpush3.bf16.msra.mxu0 %v1351_v52 }
  0xbe   :  { %1287 = vmatprep.subr.bf16.mxu0 %v1524_v29  ;;  %753 = vadd.xlane.f32.xlu0 %v729_v13  ;;  %v977_v41 = vmul.f32 %v1832_v38, %v1832_v38  ;;  %v1171_v13 = vld [vmem:[%s2021_s8 + $0x70] sm:$0xff]  }
  0xbf   :  { %755 = vadd.xlane.f32.xlu1 %v730_v14  ;;  %v1891_v14 = vunpack.c.l.bf16 %v1169_v62 }
  0xc0   :  { %1264 = vmatpush3.bf16.msra.mxu1 %v1342_v35  ;;  %v974_v35 = vmul.f32 %v1819_v32, %v1819_v32 }
  0xc1   :  { %1265 = vmatprep.subr.bf16.mxu1 %v1524_v29  ;;  %1288 = vmatpush3.bf16.msra.mxu0 %v1352_v53 }
  0xc2   :  { %1313 = vmatprep.subr.bf16.mxu0 %v1524_v29  ;;  %757 = vadd.xlane.f32.xlu0 %v731_v19 }
  0xc3   :  { %759 = vadd.xlane.f32.xlu1 %v732_v20  ;;  %v1899_v20 = vunpack.c.l.bf16 %v1171_v13 }
  0xc4   :  { %1266 = vmatpush3.bf16.msra.mxu1 %v1343_v36  ;;  %v975_v36 = vmul.f32 %v1821_v33, %v1821_v33 }
  0xc5   :  { %1267 = vmatprep.subr.bf16.mxu1 %v1524_v29 }
  0xc6   :  { %761 = vadd.xlane.f32.xlu0 %v733_v23  ;;  %v986_v23 = vmul.f32 %v1899_v20, %v1899_v20 }
  0xc7   :  { %763 = vadd.xlane.f32.xlu1 %v734_v24  ;;  %v1904_v24 = vunpack.c.h.bf16 %v1171_v13 }
  0xc8   :  { %1268 = vmatpush3.bf16.msra.mxu1 %v1344_v37  ;;  %v1830_v37 = vunpack.c.l.bf16 %v1161_v34 }
  0xc9   :  { %1293 = vmatprep.subr.bf16.mxu1 %v1524_v29 }
  0xca   :  { %765 = vadd.xlane.f32.xlu0 %v735_v30  ;;  %v976_v40 = vmul.f32 %v1830_v37, %v1830_v37 }
  0xcb   :  { %767 = vadd.xlane.f32.xlu1 %v736_v31 }
  0xce   :  { %990 = vadd.xlane.f32.xlu0 %v974_v35 }
  0xcf   :  { %992 = vadd.xlane.f32.xlu1 %v975_v36 }
  0xd2   :  { %994 = vadd.xlane.f32.xlu0 %v976_v40 }
  0xd3   :  { %996 = vadd.xlane.f32.xlu1 %v977_v41 }
 0x13b   :  { %v738_v35 = vpop.xlane.xlu0 %737 }
 0x13c   :  { %v740_v36 = vpop.xlane.xlu1 %739 }
 0x13d   :  { %v770_v40 = vadd.f32 1e-12, %v740_v36 }
 0x13f   :  { %v742_v41 = vpop.xlane.xlu0 %741 }
 0x18e   :  { %v375_v45 = vpop.f32.mrb[0].mxu1 }
 0x18f   :  { %v1259_v46 = vpop.f32.mrb[1].mxu1  ;;  %v376_v48 = vadd.f32 %v1134_v44, %v375_v45  ;;  %v979_v45 = vmul.f32 %v1844_v43, %v1844_v43 }
 0x190   :  { %v378_v47 = vpop.f32.mrb[2].mxu1  ;;  %v1136_v46 = vld [vmem:[%s2018_s5] ss:$0 sm:$0xff] }
 0x191   :  { %v379_v49 = vadd.f32 %v1134_v44, %v378_v47  ;;  %v1260_v50 = vpop.f32.mrb[3].mxu1  ;;  %v978_v44 = vmul.f32 %v1842_v42, %v1842_v42  ;;  %1000 = vadd.xlane.f32.xlu1 %v979_v45  ;;  %v771_v45 = vadd.f32 1e-12, %v742_v41 }
 0x193   :  { %v382_v51 = vpack.c.bf16 %v379_v49, %v376_v48  ;;  %998 = vadd.xlane.f32.xlu0 %v978_v44  ;;  %v744_v44 = vpop.xlane.xlu1 %743 }
 0x195   :  { %1270 = vmatmul.mubr.msk.bf16.vlgmr.msra.gmra.mrb[4].mxu1 %vm422_vm12, %v382_v51 }
 0x196   :  { %1309 = vmatprep.mubr.msk.bf16.mxu1 %vm1525_vm3, %v1524_v29  ;;  %1294 = vmatpush3.bf16.xpose.msra.mxu1 %v591_v54 }
 0x197   :  { %1295 = vmatprep.subr.bf16.mxu1 %v1524_v29 }
 0x19e   :  { %1296 = vmatpush3.bf16.xpose.msra.mxu1 %v593_v57 }
 0x19f   :  { %1297 = vmatprep.subr.bf16.mxu1 %v1524_v29 }
 0x1a6   :  { %1298 = vmatpush3.bf16.xpose.msra.mxu1 %v595_v60  ;;  %v1165_v60 = vld [vmem:[%s2021_s8 + $0x58] sm:$0xff]  }
 0x1a7   :  { %1299 = vmatprep.subr.bf16.mxu1 %v1524_v29  ;;  %v1871_v63 = vunpack.c.l.bf16 %v1165_v60  ;;  %v1875_v3 = vunpack.c.h.bf16 %v1165_v60 }
 0x1a9   :  { %v980_v0 = vmul.f32 %v1871_v63, %v1871_v63  ;;  %v981_v4 = vmul.f32 %v1875_v3, %v1875_v3 }
 0x1ab   :  { %1002 = vadd.xlane.f32.xlu0 %v980_v0  ;;  %1004 = vadd.xlane.f32.xlu1 %v981_v4 }
 0x1ae   :  { %1300 = vmatpush3.bf16.xpose.msra.mxu1 %v597_v5  ;;  %v1879_v5 = vunpack.c.l.bf16 %v1167_v61 }
 0x1af   :  { %1301 = vmatprep.subr.bf16.mxu1 %v1524_v29  ;;  %1008 = vadd.xlane.f32.xlu1 %v983_v10 }
 0x1b6   :  { %1302 = vmatpush3.bf16.xpose.msra.mxu1 %v599_v8  ;;  %v982_v8 = vmul.f32 %v1879_v5, %v1879_v5 }
 0x1b7   :  { %1303 = vmatprep.subr.bf16.mxu1 %v1524_v29 }
 0x1b8   :  { %1006 = vadd.xlane.f32.xlu0 %v982_v8 }
 0x1be   :  { %1304 = vmatpush3.bf16.xpose.msra.mxu1 %v601_v15  ;;  %v984_v15 = vmul.f32 %v1891_v14, %v1891_v14 }
 0x1bf   :  { %1305 = vmatprep.subr.bf16.mxu1 %v1524_v29 }
 0x1c0   :  { %1010 = vadd.xlane.f32.xlu0 %v984_v15 }
 0x1c4   :  { %1014 = vadd.xlane.f32.xlu0 %v986_v23 }
 0x1c6   :  { %1306 = vmatpush3.bf16.xpose.msra.mxu1 %v603_v18  ;;  %v1895_v18 = vunpack.c.h.bf16 %v1169_v62 }
 0x1c7   :  { %1307 = vmatprep.subr.bf16.mxu1 %v1524_v29 }
 0x1c8   :  { %v985_v19 = vmul.f32 %v1895_v18, %v1895_v18 }
 0x1ca   :  { %1012 = vadd.xlane.f32.xlu1 %v985_v19 }
 0x1ce   :  { %1308 = vmatpush3.bf16.xpose.msra.mxu1 %v605_v25  ;;  %v1173_v25 = vld [vmem:[%s2021_s8 + $0x78] sm:$0xff]  }
 0x1cf   :  { %v1911_v30 = vunpack.c.l.bf16 %v1173_v25  ;;  %v1915_v31 = vunpack.c.h.bf16 %v1173_v25 }
 0x268   :  { %v460_v47 = vpop.f32.mrb[4].mxu1 }
 0x269   :  { %v461_v48 = vadd.f32 %v1136_v46, %v460_v47  ;;  %v1271_v49 = vpop.f32.mrb[5].mxu1  ;;  %v746_v47 = vpop.xlane.xlu0 %745 }
 0x26a   :  { %v463_v50 = vpop.f32.mrb[6].mxu1  ;;  %v773_v49 = vadd.f32 1e-12, %v746_v47 }
 0x26b   :  { %v464_v51 = vadd.f32 %v1136_v46, %v463_v50  ;;  %v1272_v52 = vpop.f32.mrb[7].mxu1  ;;  %v467_v53 = vmax.f32 %v461_v48, 0.0  ;;  %v772_v46 = vadd.f32 1e-12, %v744_v44  ;;  %v748_v48 = vpop.xlane.xlu1 %747 }
 0x26c   :  { %v774_v50 = vadd.f32 1e-12, %v748_v48 }
 0x26d   :  { %v468_v54 = vmax.f32 %v464_v51, 0.0  ;;  %v750_v51 = vpop.xlane.xlu0 %749 }
 0x26f   :  { %v469_v57 = vpack.c.bf16 %v468_v54, %v467_v53  ;;  %v752_v52 = vpop.xlane.xlu1 %751  ;;  %v775_v54 = vadd.f32 1e-12, %v750_v51 }
 0x271   :  { %1290 = vmatmul.mubr.bf16.vlgmr.msra.gmra.mrb[0].mxu0 %v469_v57  ;;  %v776_v57 = vadd.f32 1e-12, %v752_v52  ;;  %v754_v0 = vpop.xlane.xlu0 %753 }
 0x272   :  { %1314 = vmatpush3.bf16.xpose.msra.mxu0 %v1159_v28  ;;  %1329 = vmatprep.mubr.msk.bf16.mxu0 %vm1525_vm3, %v1524_v29  ;;  %v987_v28 = vmul.f32 %v1904_v24, %v1904_v24  ;;  %v777_v10 = vadd.f32 1e-12, %v754_v0 }
 0x273   :  { %1315 = vmatprep.subr.bf16.mxu0 %v1524_v29  ;;  %v756_v4 = vpop.xlane.xlu1 %755 }
 0x274   :  { %1016 = vadd.xlane.f32.xlu1 %v987_v28 }
 0x27a   :  { %1316 = vmatpush3.bf16.xpose.msra.mxu0 %v1161_v34  ;;  %v989_v34 = vmul.f32 %v1915_v31, %v1915_v31 }
 0x27b   :  { %1317 = vmatprep.subr.bf16.mxu0 %v1524_v29 }
 0x27c   :  { %1020 = vadd.xlane.f32.xlu1 %v989_v34 }
 0x282   :  { %1318 = vmatpush3.bf16.xpose.msra.mxu0 %v1163_v39  ;;  %v769_v39 = vadd.f32 1e-12, %v738_v35 }
 0x283   :  { %1319 = vmatprep.subr.bf16.mxu0 %v1524_v29 }
 0x284   :  { %1385 = vrsqrt.f32 %v769_v39 }
 0x285   :  { %1387 = vrsqrt.f32 %v770_v40 }
 0x286   :  { %1389 = vrsqrt.f32 %v771_v45 }
 0x287   :  { %1391 = vrsqrt.f32 %v772_v46 }
 0x288   :  { %1393 = vrsqrt.f32 %v773_v49 }
 0x289   :  { %1395 = vrsqrt.f32 %v774_v50 }
 0x28a   :  { %1320 = vmatpush3.bf16.xpose.msra.mxu0 %v1165_v60  ;;  %1397 = vrsqrt.f32 %v775_v54 }
 0x28b   :  { %1321 = vmatprep.subr.bf16.mxu0 %v1524_v29  ;;  %1399 = vrsqrt.f32 %v776_v57 }
 0x28c   :  { %1401 = vrsqrt.f32 %v777_v10 }
 0x28e   :  { %v1386_v53 = vpop.eup %1385 }
 0x28f   :  { %v1388_v60 = vpop.eup %1387 }
 0x290   :  { %v1390_v8 = vpop.eup %1389 }
 0x291   :  { %v1392_v15 = vpop.eup %1391  ;;  %v803_v19 = vmul.f32 %v1390_v8, %v1734_v58 }
 0x292   :  { %1322 = vmatpush3.bf16.xpose.msra.mxu0 %v1167_v61  ;;  %v801_v61 = vmul.f32 %v1386_v53, %v1727_v55  ;;  %v804_v23 = vmul.f32 %v1392_v15, %v1736_v59  ;;  %v758_v55 = vpop.xlane.xlu0 %757 }
 0x293   :  { %1323 = vmatprep.subr.bf16.mxu0 %v1524_v29  ;;  %819 = vst [vmem:[#allocation4 + $0x10] sm:$0xff] %v803_v19  ;;  %v779_v28 = vadd.f32 1e-12, %v758_v55 }
 0x294   :  { %817 = vst [vmem:[#allocation4] sm:$0xff] %v801_v61  ;;  %820 = vst [vmem:[#allocation4 + $0x18] sm:$0xff] %v804_v23 }
 0x296   :  { %v762_v58 = vpop.xlane.xlu0 %761 }
 0x297   :  { %v781_v40 = vadd.f32 1e-12, %v762_v58 }
 0x29a   :  { %1324 = vmatpush3.bf16.xpose.msra.mxu0 %v1169_v62  ;;  %v802_v62 = vmul.f32 %v1388_v60, %v1729_v56  ;;  %v1394_v56 = vpop.eup %1393 }
 0x29b   :  { %1325 = vmatprep.subr.bf16.mxu0 %v1524_v29  ;;  %v1396_v34 = vpop.eup %1395  ;;  %v805_v35 = vmul.f32 %v1394_v56, %v1750_v1  ;;  %v766_v1 = vpop.xlane.xlu0 %765 }
 0x29c   :  { %818 = vst [vmem:[#allocation4 + $0x8] sm:$0xff] %v802_v62  ;;  %v806_v36 = vmul.f32 %v1396_v34, %v1752_v2  ;;  %v1398_v59 = vpop.eup %1397  ;;  %v783_v48 = vadd.f32 1e-12, %v766_v1 }
 0x29d   :  { %821 = vst [vmem:[#allocation4 + $0x20] sm:$0xff] %v805_v35  ;;  %v1400_v44 = vpop.eup %1399  ;;  %v807_v45 = vmul.f32 %v1398_v59, %v1761_v6 }
 0x29e   :  { %822 = vst [vmem:[#allocation4 + $0x28] sm:$0xff] %v806_v36  ;;  %v808_v46 = vmul.f32 %v1400_v44, %v1763_v7  ;;  %v1402_v2 = vpop.eup %1401 }
 0x29f   :  { %823 = vst [vmem:[#allocation4 + $0x30] sm:$0xff] %v807_v45  ;;  %v809_v51 = vmul.f32 %v1402_v2, %v1773_v11  ;;  %v991_v6 = vpop.xlane.xlu0 %990 }
 0x2a0   :  { %824 = vst [vmem:[#allocation4 + $0x38] sm:$0xff] %v808_v46  ;;  %v1022_v54 = vadd.f32 1e-12, %v991_v6 }
 0x2a1   :  { %825 = vst [vmem:[#allocation4 + $0x40] sm:$0xff] %v809_v51 }
 0x2a2   :  { %1326 = vmatpush3.bf16.xpose.msra.mxu0 %v1171_v13  ;;  %v778_v13 = vadd.f32 1e-12, %v756_v4 }
 0x2a3   :  { %1327 = vmatprep.subr.bf16.mxu0 %v1524_v29  ;;  %v988_v29 = vmul.f32 %v1911_v30, %v1911_v30  ;;  %v995_v11 = vpop.xlane.xlu0 %994 }
 0x2a4   :  { %1403 = vrsqrt.f32 %v778_v13  ;;  %v1024_v4 = vadd.f32 1e-12, %v995_v11 }
 0x2a5   :  { %1018 = vadd.xlane.f32.xlu0 %v988_v29  ;;  %1405 = vrsqrt.f32 %v779_v28 }
 0x2aa   :  { %1328 = vmatpush3.bf16.xpose.msra.mxu0 %v1173_v25  ;;  %v760_v25 = vpop.xlane.xlu1 %759 }
 0x2ab   :  { %v780_v29 = vadd.f32 1e-12, %v760_v25 }
 0x2ad   :  { %1407 = vrsqrt.f32 %v780_v29 }
 0x2ae   :  { %v764_v39 = vpop.xlane.xlu1 %763  ;;  %1409 = vrsqrt.f32 %v781_v40  ;;  %v1404_v50 = vpop.eup %1403 }
 0x2af   :  { %v782_v41 = vadd.f32 1e-12, %v764_v39  ;;  %v810_v52 = vmul.f32 %v1404_v50, %v1775_v12  ;;  %v1406_v7 = vpop.eup %1405 }
 0x2b0   :  { %v811_v61 = vmul.f32 %v1406_v7, %v1784_v16  ;;  %v999_v16 = vpop.xlane.xlu0 %998 }
 0x2b1   :  { %1411 = vrsqrt.f32 %v782_v41  ;;  %826 = vst [vmem:[#allocation4 + $0x48] sm:$0xff] %v810_v52  ;;  %v1026_v23 = vadd.f32 1e-12, %v999_v16 }
 0x2b2   :  { %v768_v47 = vpop.xlane.xlu1 %767  ;;  %1413 = vrsqrt.f32 %v783_v48  ;;  %827 = vst [vmem:[#allocation4 + $0x50] sm:$0xff] %v811_v61 }
 0x2b3   :  { %v784_v49 = vadd.f32 1e-12, %v768_v47 }
 0x2b4   :  { %v1003_v6 = vpop.xlane.xlu0 %1002 }
 0x2b5   :  { %1415 = vrsqrt.f32 %v784_v49 }
 0x2b6   :  { %v993_v53 = vpop.xlane.xlu1 %992  ;;  %1417 = vrsqrt.f32 %v1022_v54  ;;  %v1028_v54 = vadd.f32 1e-12, %v1003_v6 }
 0x2b7   :  { %v1023_v57 = vadd.f32 1e-12, %v993_v53  ;;  %v1408_v60 = vpop.eup %1407 }
 0x2b8   :  { %v812_v62 = vmul.f32 %v1408_v60, %v1786_v17  ;;  %v1410_v12 = vpop.eup %1409  ;;  %v1007_v11 = vpop.xlane.xlu0 %1006 }
 0x2b9   :  { %1419 = vrsqrt.f32 %v1023_v57  ;;  %v813_v13 = vmul.f32 %v1410_v12, %v1796_v21 }
 0x2ba   :  { %v997_v0 = vpop.xlane.xlu1 %996  ;;  %828 = vst [vmem:[#allocation4 + $0x58] sm:$0xff] %v812_v62  ;;  %1421 = vrsqrt.f32 %v1024_v4 }
 0x2bb   :  { %v1025_v8 = vadd.f32 1e-12, %v997_v0  ;;  %v1412_v10 = vpop.eup %1411  ;;  %829 = vst [vmem:[#allocation4 + $0x60] sm:$0xff] %v813_v13 }
 0x2bc   :  { %v814_v15 = vmul.f32 %v1412_v10, %v1798_v22  ;;  %v1414_v17 = vpop.eup %1413 }
 0x2bd   :  { %1423 = vrsqrt.f32 %v1025_v8  ;;  %v815_v56 = vmul.f32 %v1414_v17, %v1807_v26  ;;  %v1030_v8 = vadd.f32 1e-12, %v1007_v11 }
 0x2be   :  { %v1001_v19 = vpop.xlane.xlu1 %1000  ;;  %830 = vst [vmem:[#allocation4 + $0x68] sm:$0xff] %v814_v15  ;;  %1425 = vrsqrt.f32 %v1026_v23 }
 0x2bf   :  { %v1027_v55 = vadd.f32 1e-12, %v1001_v19  ;;  %v1416_v25 = vpop.eup %1415  ;;  %831 = vst [vmem:[#allocation4 + $0x70] sm:$0xff] %v815_v56  ;;  %v1011_v19 = vpop.xlane.xlu0 %1010 }
 0x2c0   :  { %v816_v28 = vmul.f32 %v1416_v25, %v1809_v27  ;;  %v1418_v21 = vpop.eup %1417  ;;  %v1032_v17 = vadd.f32 1e-12, %v1011_v19 }
 0x2c1   :  { %1427 = vrsqrt.f32 %v1027_v55  ;;  %v1054_v29 = vmul.f32 %v1418_v21, %v1819_v32  ;;  %v1142_v32 = vld [vmem:[%s2020_s7] ss:$0 sm:$0xff]  ;;  %s1526_s7 = smov [#allocation4]  }
 0x2c2   :  { %832 = vst [vmem:[#allocation4 + $0x78] sm:$0xff] %v816_v28  ;;  %v1005_v57 = vpop.xlane.xlu1 %1004  ;;  %1429 = vrsqrt.f32 %v1028_v54  ;;  %s1104_s23 = sshll.u32 %s1526_s7, 4  ;;  %s1105_s23 = int_to_ptr.vmem [resolvable:$true] %s1104_s23 }
 0x2c3   :  { %v1420_v22 = vpop.eup %1419  ;;  %1071 = vst [vmem:[#allocation4 + $0x80] sm:$0xff] %v1054_v29  ;;  %v1029_v62 = vadd.f32 1e-12, %v1005_v57  ;;  %v1015_v25 = vpop.xlane.xlu0 %1014  ;;  %s1453_s24 = scalar_lea.vmem %s1105_s23, 4096  ;;  %p1458_p1 = scmp.lt.s32.totalorder %s1105_s23, %s1105_s23 }
 0x2c4   :  { %v1055_v34 = vmul.f32 %v1420_v22, %v1821_v33  ;;  %v1422_v35 = vpop.eup %1421  ;;  %v1034_v28 = vadd.f32 1e-12, %v1015_v25  ;;  %p1454_p0 = scmp.ne.s32.totalorder %s1105_s23, %s1453_s24  ;;  %p1459_p2 = scmp.lt.s32.totalorder %s1453_s24, %s1453_s24 }
 0x2c5   :  { %v1056_v58 = vmul.f32 %v1422_v35, %v1830_v37  ;;  %1431 = vrsqrt.f32 %v1029_v62 }
 0x2c6   :  { %1072 = vst [vmem:[#allocation4 + $0x88] sm:$0xff] %v1055_v34  ;;  %v1009_v10 = vpop.xlane.xlu1 %1008  ;;  %1433 = vrsqrt.f32 %v1030_v8  ;;  %p1460_p3 = por %p1459_p2, %p1458_p1 }
 0x2c7   :  { %v1424_v36 = vpop.eup %1423  ;;  %1073 = vst [vmem:[#allocation4 + $0x90] sm:$0xff] %v1056_v58  ;;  %v1031_v16 = vadd.f32 1e-12, %v1009_v10 }
 0x2c8   :  { %v1057_v26 = vmul.f32 %v1424_v36, %v1832_v38  ;;  %v1426_v27 = vpop.eup %1425  ;;  %p1461_p4 = pnand %p1460_p3, %p1454_p0 }
 0x2c9   :  { %v1058_v59 = vmul.f32 %v1426_v27, %v1842_v42  ;;  %1435 = vrsqrt.f32 %v1031_v16 }
 0x2ca   :  { %1074 = vst [vmem:[#allocation4 + $0x98] sm:$0xff] %v1057_v26  ;;  %v1013_v23 = vpop.xlane.xlu1 %1012  ;;  %1437 = vrsqrt.f32 %v1032_v17 }
 0x2cb   :  { %v1428_v39 = vpop.eup %1427  ;;  %1075 = vst [vmem:[#allocation4 + $0xa0] sm:$0xff] %v1058_v59  ;;  %v1033_v55 = vadd.f32 1e-12, %v1013_v23 }
 0x2cc   :  { %v1059_v40 = vmul.f32 %v1428_v39, %v1844_v43  ;;  %v1430_v56 = vpop.eup %1429 }
 0x2cd   :  { %1439 = vrsqrt.f32 %v1033_v55  ;;  %v1060_v21 = vmul.f32 %v1430_v56, %v1871_v63 }
 0x2ce   :  { %1076 = vst [vmem:[#allocation4 + $0xa8] sm:$0xff] %v1059_v40  ;;  %1441 = vrsqrt.f32 %v1034_v28 }
 0x2cf   :  { %v1432_v29 = vpop.eup %1431  ;;  %1077 = vst [vmem:[#allocation4 + $0xb0] sm:$0xff] %v1060_v21 }
 0x2d0   :  { %v1061_v35 = vmul.f32 %v1432_v29, %v1875_v3  ;;  %v1434_v26 = vpop.eup %1433 }
 0x2d1   :  { %v1062_v59 = vmul.f32 %v1434_v26, %v1879_v5 }
 0x2d2   :  { %1078 = vst [vmem:[#allocation4 + $0xb8] sm:$0xff] %v1061_v35 }
 0x2d3   :  { %v1436_v39 = vpop.eup %1435  ;;  %1079 = vst [vmem:[#allocation4 + $0xc0] sm:$0xff] %v1062_v59 }
 0x2d4   :  { %v1063_v63 = vmul.f32 %v1436_v39, %v1884_v9 }
 0x2d6   :  { %1080 = vst [vmem:[#allocation4 + $0xc8] sm:$0xff] %v1063_v63 }
 0x301   :  { %v1017_v22 = vpop.xlane.xlu1 %1016 }
 0x302   :  { %v1035_v34 = vadd.f32 1e-12, %v1017_v22 }
 0x304   :  { %1443 = vrsqrt.f32 %v1035_v34 }
 0x309   :  { %v1021_v27 = vpop.xlane.xlu1 %1020 }
 0x30a   :  { %v1037_v40 = vadd.f32 1e-12, %v1021_v27 }
 0x332   :  { %v1019_v36 = vpop.xlane.xlu0 %1018 }
 0x333   :  { %v1036_v58 = vadd.f32 1e-12, %v1019_v36 }
 0x335   :  { %1445 = vrsqrt.f32 %v1036_v58 }
 0x336   :  { %1447 = vrsqrt.f32 %v1037_v40 }
 0x344   :  { %v575_v33 = vpop.f32.mrb[0].mxu0 }
 0x345   :  { %v576_v41 = vadd.f32 %v1142_v32, %v575_v33  ;;  %v1291_v44 = vpop.f32.mrb[1].mxu0 }
 0x346   :  { %v578_v37 = vpop.f32.mrb[2].mxu0 }
 0x347   :  { %v582_v45 = vrot.slane %v576_v41, 4  ;;  %v579_v38 = vadd.f32 %v1142_v32, %v578_v37  ;;  %v1292_v46 = vpop.f32.mrb[3].mxu0  ;;  %v1438_v32 = vpop.eup %1437 }
 0x348   :  { %v1064_v33 = vmul.f32 %v1438_v32, %v1891_v14  ;;  %v1440_v3 = vpop.eup %1439 }
 0x349   :  { %v583_v1 = vadd.f32 %v582_v45, %v576_v41  ;;  %v833_v47 = vrot.slane %v579_v38, 4  ;;  %v1442_v44 = vpop.eup %1441 }
 0x34a   :  { %1081 = vst [vmem:[#allocation4 + $0xd0] sm:$0xff] %v1064_v33  ;;  %v1066_v37 = vmul.f32 %v1442_v44, %v1899_v20  ;;  %v1444_v45 = vpop.eup %1443 }
 0x34b   :  { %v584_v2 = vrot.slane %v583_v1, 2  ;;  %v834_v48 = vadd.f32 %v833_v47, %v579_v38  ;;  %v1067_v5 = vmul.f32 %v1444_v45, %v1904_v24 }
 0x34c   :  { %1083 = vst [vmem:[#allocation4 + $0xe0] sm:$0xff] %v1066_v37 }
 0x34d   :  { %v585_v42 = vadd.f32 %v584_v2, %v583_v1  ;;  %v835_v49 = vrot.slane %v834_v48, 2  ;;  %1084 = vst [vmem:[#allocation4 + $0xe8] sm:$0xff] %v1067_v5 }
 0x34f   :  { %v586_v43 = vrot.slane %v585_v42, 1  ;;  %v836_v50 = vadd.f32 %v835_v49, %v834_v48 }
 0x351   :  { %v587_v51 = vadd.f32 %v586_v43, %v585_v42  ;;  %v837_v52 = vrot.slane %v836_v50, 1 }
 0x353   :  { %v589_v53 = vmul.f32 0.125, %v587_v51  ;;  %v838_v7 = vadd.f32 %v837_v52, %v836_v50 }
 0x355   :  { %v1944_v60 = vsub.f32 %v576_v41, %v589_v53  ;;  %v839_v61 = vmul.f32 0.125, %v838_v7  ;;  %v1065_v41 = vmul.f32 %v1440_v3, %v1895_v18 }
 0x357   :  { %v1946_v0 = vsub.f32 %v579_v38, %v839_v61  ;;  %v698_v12 = vmul.f32 %v1944_v60, %v1944_v60  ;;  %v607_v4 = vpack.c.bf16 %v1944_v60, %v1944_v60  ;;  %1082 = vst [vmem:[#allocation4 + $0xd8] sm:$0xff] %v1065_v41  ;;  %v1446_v38 = vpop.eup %1445 }
 0x358   :  { %v1068_v9 = vmul.f32 %v1446_v38, %v1911_v30  ;;  %v1448_v46 = vpop.eup %1447 }
 0x359   :  { %699 = vadd.xlane.f32.xlu0 %v698_v12  ;;  %1310 = vmatmul.mubr.bf16.vlgmr.msra.gmra.mrb[8].mxu1 %v607_v4  ;;  %v950_v13 = vmul.f32 %v1946_v0, %v1946_v0  ;;  %v858_v15 = vpack.c.bf16 %v1946_v0, %v1946_v0  ;;  %v1069_v14 = vmul.f32 %v1448_v46, %v1915_v31 }
 0x35a   :  { %1085 = vst [vmem:[#allocation4 + $0xf0] sm:$0xff] %v1068_v9 }
 0x35b   :  { %951 = vadd.xlane.f32.xlu1 %v950_v13  ;;  %1330 = vmatmul.mubr.bf16.vlgmr.msra.gmra.mrb[4].mxu0 %v858_v15  ;;  %1086 = vst [vmem:[#allocation4 + $0xf8] sm:$0xff] %v1069_v14 }
 0x35c   :  { %1464 = shalt.err (!%p1461_p4)
}
 0x35d   :  { %s1465_s4 = scalar_lea.hbm %s2023_s10, 4096 }
 0x35e   :  { %p1466_p5 = scmp.ne.s32.totalorder %s2023_s10, %s1465_s4  ;;  %p1469_p6 = scmp.lt.u32.totalorder %s1465_s4, %s2023_s10 }
 0x360   :  { %p1471_p7 = pnand %p1469_p6, %p1466_p5 }
 0x362   :  { %1474 = shalt.err (!%p1471_p7)
}
 0x363   :  { %s1527_s12 = smov 128   ;;  %s1528_s13 = smov 8  }
 0x364   :  { %1110 = dma.vmem_to_hbm [thread:$0]  %s1105_s23, 4096, %s2023_s10, [#allocation5], %s1527_s12, %s1527_s12, %s1528_s13  }
 0x365   :  { %s1529_s2 = smov [#allocation2]  }
 0x366   :  { %s1092_s3 = sshll.u32 %s1529_s2, 4  ;;  %s1093_s3 = int_to_ptr.vmem [resolvable:$true] %s1092_s3 }
 0x367   :  { %s1475_s5 = scalar_lea.vmem %s1093_s3, 256  ;;  %p1480_p9 = scmp.lt.s32.totalorder %s1093_s3, %s1093_s3 }
 0x368   :  { %p1476_p8 = scmp.ne.s32.totalorder %s1093_s3, %s1475_s5  ;;  %p1481_p10 = scmp.lt.s32.totalorder %s1475_s5, %s1475_s5 }
 0x36a   :  { %p1482_p11 = por %p1481_p10, %p1480_p9 }
 0x36c   :  { %p1483_p12 = pnand %p1482_p11, %p1476_p8 }
 0x3e6   :  { %v700_v18 = vpop.xlane.xlu0 %699 }
 0x3e7   :  { %v701_v20 = vadd.f32 1e-12, %v700_v18 }
 0x3e8   :  { %v952_v24 = vpop.xlane.xlu1 %951 }
 0x3e9   :  { %1449 = vrsqrt.f32 %v701_v20  ;;  %v953_v30 = vadd.f32 1e-12, %v952_v24 }
 0x3eb   :  { %1451 = vrsqrt.f32 %v953_v30 }
 0x3f3   :  { %v1450_v31 = vpop.eup %1449 }
 0x3f4   :  { %v703_v1 = vmul.f32 %v1450_v31, %v1944_v60 }
 0x3f5   :  { %v1452_v47 = vpop.eup %1451 }
 0x3f6   :  { %704 = vst [vmem:[#allocation2] sm:$0xff] %v703_v1  ;;  %v955_v2 = vmul.f32 %v1452_v47, %v1946_v0 }
 0x3f8   :  { %957 = vst [vmem:[#allocation2 + $0x8] sm:$0xff] %v955_v2 }
 0x3f9   :  { %1486 = shalt.err (!%p1483_p12)
}
 0x3fa   :  { %s1487_s15 = scalar_lea.hbm %s2022_s9, 256 }
 0x3fb   :  { %p1488_p13 = scmp.ne.s32.totalorder %s2022_s9, %s1487_s15  ;;  %p1491_p0 = scmp.lt.u32.totalorder %s1487_s15, %s2022_s9 }
 0x3fd   :  { %p1493_p1 = pnand %p1491_p0, %p1488_p13 }
 0x3ff   :  { %1496 = shalt.err (!%p1493_p1)
}
 0x400   :  { %1098 = dma.vmem_to_hbm [thread:$0]  %s1093_s3, 256, %s2022_s9, [#allocation3], %s1527_s12, %s1527_s12, %s1528_s13  }
 0x401   :  { %s1530_s21 = smov [#allocation6]  }
 0x402   :  { %s1116_s8 = sshll.u32 %s1530_s21, 4  ;;  %s1117_s8 = int_to_ptr.vmem [resolvable:$true] %s1116_s8 }
 0x403   :  { %s1497_s22 = scalar_lea.vmem %s1117_s8, 256  ;;  %p1502_p3 = scmp.lt.s32.totalorder %s1117_s8, %s1117_s8 }
 0x404   :  { %p1498_p2 = scmp.ne.s32.totalorder %s1117_s8, %s1497_s22  ;;  %p1503_p4 = scmp.lt.s32.totalorder %s1497_s22, %s1497_s22 }
 0x406   :  { %p1504_p5 = por %p1503_p4, %p1502_p3 }
 0x408   :  { %p1505_p6 = pnand %p1504_p5, %p1498_p2 }
 0x42c   :  { %v690_v48 = vpop.f32.mrb[8].mxu1 }
 0x42d   :  { %v696_v42 = vsub.f32 0.0, %v690_v48  ;;  %v1311_v49 = vpop.f32.mrb[9].mxu1 }
 0x42e   :  { %v693_v43 = vpop.f32.mrb[10].mxu1  ;;  %v941_v50 = vpop.f32.mrb[4].mxu0 }
 0x42f   :  { %697 = vst [vmem:[#allocation6] sm:$0xff] %v696_v42  ;;  %v947_v51 = vsub.f32 0.0, %v941_v50  ;;  %v1312_v52 = vpop.f32.mrb[11].mxu1  ;;  %v1331_v6 = vpop.f32.mrb[5].mxu0 }
 0x430   :  { %v944_v53 = vpop.f32.mrb[6].mxu0 }
 0x431   :  { %949 = vst [vmem:[#allocation6 + $0x8] sm:$0xff] %v947_v51  ;;  %v1332_v7 = vpop.f32.mrb[7].mxu0 }
 0x432   :  { %1508 = shalt.err (!%p1505_p6)
}
 0x433   :  { %s1509_s23 = scalar_lea.hbm %s2024_s11, 256 }
 0x434   :  { %p1510_p7 = scmp.ne.s32.totalorder %s2024_s11, %s1509_s23  ;;  %p1513_p8 = scmp.lt.u32.totalorder %s1509_s23, %s2024_s11 }
 0x436   :  { %p1515_p9 = pnand %p1513_p8, %p1510_p7 }
 0x438   :  { %1518 = shalt.err (!%p1515_p9)
}
 0x439   :  { %1122 = dma.vmem_to_hbm [thread:$0]  %s1117_s8, 256, %s2024_s11, [#allocation5], %s1527_s12, %s1527_s12, %s1528_s13  }
 0x43a   :  { %1519 = dma.done.wait [#allocation3], 256  }
 0x43b   :  { %1520 = vsyncadd [#allocation3], 4294967040 }
 0x43c   :  { %1521 = dma.done.wait [#allocation5], 4352  }
 0x43d   :  { %1522 = vsyncadd [#allocation5], 4294962944 }
 0x43e   :  { %1132 = vsyncpa [#allocation3], 1 }
 0x43f   :  { %1133 = vsyncpa [#allocation5], 1 }

</bundles_post_ra>
